<compile_context>
chip_gen: v7x
topology: tpu7x:2x2x1
jax: 0.10.0
libtpu: 0.0.40
codegen_flags: <defaults>
</compile_context>

<pallas_src>
import functools

import jax
import jax.numpy as jnp
from jax.experimental import pallas as pl
from jax.experimental.pallas import tpu as pltpu


def _round_up(n, m):
    return ((n + m - 1) // m) * m


def _location_kernel(x_ref, w_ref, out_ref, *, K, T):
    # x_ref:   (Bblk, T + 2*pad, 2)   channels-last input window
    # w_ref:   (2*K, A_pad)           fused conv+dense weight (lane-dense)
    # out_ref: (Bblk, T, A_pad)       lane-dense output block
    Bblk, _, A_pad = out_ref.shape

    # One load (and one f32 cast) of the whole x block per grid step.
    xb = x_ref[...].astype(jnp.float32)

    acc = jnp.zeros((Bblk, T, A_pad), jnp.float32)
    for k in range(K):                              # static unroll over taps (small K)
        win = xb[:, k:k + T, :]                     # (Bblk, T, 2): slice of registers
        for c in range(2):
            j = 2 * k + c
            w_row = w_ref[j:j + 1, :][None]         # (1, 1, A_pad): loaded once per tap
            # (Bblk, T, 1) * (1, 1, A_pad) -> (Bblk, T, A_pad): whole-slab VPU FMA.
            acc = acc + win[:, :, c:c + 1] * w_row
    out_ref[...] = acc.astype(out_ref.dtype)


def fuse_location_weights(w_conv, w_dense):
    """Fold the bias-free conv + dense weights into one lane-dense (2K, A_pad) matrix.

    Exact (no bias, no intervening nonlinearity):
        W_fused[2k + c, a] = sum_f w_conv[f, c, k] * w_dense[a, f]

    Call ONCE outside the per-decoder-step hot path and pass the result to
    location_layer_forward(..., w_fused=...).
    """
    F, Cin, K = w_conv.shape
    assert Cin == 2, "LocationLayer conv expects 2 input channels"
    A = w_dense.shape[0]
    A_pad = _round_up(A, 128)
    wconv_flat = jnp.transpose(w_conv, (2, 1, 0)).reshape(2 * K, F)          # [2K, F]
    w_fused = jnp.dot(wconv_flat, jnp.transpose(w_dense, (1, 0)),
                      preferred_element_type=jnp.float32)                    # [2K, A]
    return jnp.pad(w_fused, ((0, 0), (0, A_pad - A)))                        # [2K, A_pad]


def location_layer_forward(x, w_conv, w_dense, *, w_fused=None, batch_block=None):
    """x: [B, 2, T] (PyTorch NCW). w_conv: [F, 2, K]. w_dense: [A, F].

    Returns [B, T, A], matching LocationLayer.forward.
    """
    B, C, T = x.shape
    assert C == 2
    F, Cin, K = w_conv.shape
    assert Cin == 2
    assert K % 2 == 1, ("kernel_size must be odd: pad=(K-1)//2 only gives a "
                        "length-T 'same' conv for odd K (Tacotron2 asserts this)")
    A = w_dense.shape[0]
    A_pad = _round_up(A, 128)
    pad = (K - 1) // 2
    T_padded = T + 2 * pad

    if w_fused is None:
        # NOTE: per-call fold; in a real decoder loop precompute this once with
        # fuse_location_weights() and pass it in.
        w_fused = fuse_location_weights(w_conv, w_dense)
    assert w_fused.shape == (2 * K, A_pad)

    # ---- batch blocking ----
    if batch_block is None:
        # >= 2 parallel grid steps whenever B >= 2 so both v7x TensorCores get
        # work; B == 1 stays a single fat step.  (On single-TC v5e/v6e the
        # extra step costs ~0.35us; pass batch_block=B to force one fat step.)
        Bblk = -(-B // 2) if B >= 2 else 1
    else:
        Bblk = max(1, min(batch_block, B))

    # Cap the block so double-buffered x + out tiles stay well inside every
    # generation's default scoped-VMEM budget (v7x: 64 MiB phys / ~32 MiB scoped).
    def _tiles_bytes(bb):
        x_tile = bb * _round_up(T_padded, 8) * 128 * 4   # channels-last: 2 lanes pad to 128
        o_tile = bb * _round_up(T, 8) * A_pad * 4
        return 2 * (x_tile + o_tile)                     # x2 for double buffering
    while Bblk > 1 and _tiles_bytes(Bblk) > 12 * 1024 * 1024:
        Bblk = -(-Bblk // 2)

    n_bblk = -(-B // Bblk)
    B_pad = n_bblk * Bblk

    # channels-last + zero-pad time axis + pad batch to a multiple of Bblk
    x_cl = jnp.transpose(x, (0, 2, 1))                                   # [B, T, 2]
    x_hbm = jnp.pad(x_cl, ((0, B_pad - B), (pad, pad), (0, 0)))          # [B_pad, T_padded, 2]

    kernel = functools.partial(_location_kernel, K=K, T=T)

    out = pl.pallas_call(
        kernel,
        out_shape=jax.ShapeDtypeStruct((B_pad, T, A_pad), x.dtype),
        grid_spec=pltpu.PrefetchScalarGridSpec(
            num_scalar_prefetch=0,
            grid=(n_bblk,),
            in_specs=[
                pl.BlockSpec((Bblk, T_padded, 2), lambda i: (i, 0, 0)),
                # Same weight block every step -> stays resident in VMEM.
                pl.BlockSpec((2 * K, A_pad), lambda i: (0, 0)),
            ],
            out_specs=pl.BlockSpec((Bblk, T, A_pad), lambda i: (i, 0, 0)),
        ),
        compiler_params=pltpu.CompilerParams(
            dimension_semantics=("parallel",),
        ),
    )(x_hbm, w_fused)

    return out[:B, :, :A]


def _reference(x, w_conv, w_dense):
    """Pure-JAX reference (mirrors the PyTorch module)."""
    B, C, T = x.shape
    F, _, K = w_conv.shape
    pad = (K - 1) // 2
    x_pad = jnp.pad(x, ((0, 0), (0, 0), (pad, pad)))            # [B, 2, T_pad]
    conv = jnp.zeros((B, F, T), jnp.float32)
    for k in range(K):
        conv = conv + jnp.einsum("bct,fc->bft", x_pad[:, :, k:k + T], w_conv[:, :, k])
    proc = jnp.transpose(conv, (0, 2, 1))                       # [B, T, F]
    return jnp.einsum("btf,af->bta", proc, w_dense)             # [B, T, A]


if __name__ == "__main__":
    # Small, deterministic config.
    B, T = 2, 16
    attention_n_filters = 32       # F
    attention_kernel_size = 3      # K (odd, as Tacotron2 requires)
    attention_dim = 32             # A

    key = jax.random.PRNGKey(0)
    k_x, k_wc, k_wd = jax.random.split(key, 3)

    # attention_weights_cat: [B, 2, T]  (prev attention weights + cumulative)
    x = jax.random.normal(k_x, (B, 2, T), dtype=jnp.float32)
    # ConvNorm weight: [out_channels=F, in_channels=2, kernel_size=K], bias=False
    w_conv = jax.random.normal(k_wc, (attention_n_filters, 2, attention_kernel_size),
                               dtype=jnp.float32) * 0.1
    # LinearNorm weight: [attention_dim=A, attention_n_filters=F], bias=False
    w_dense = jax.random.normal(k_wd, (attention_dim, attention_n_filters),
                                dtype=jnp.float32) * 0.1

    # Weight fold done once, outside the per-step hot path.
    w_fused = jax.block_until_ready(fuse_location_weights(w_conv, w_dense))

    fwd = jax.jit(location_layer_forward)
    out = jax.block_until_ready(fwd(x, w_conv, w_dense, w_fused=w_fused))
    ref = jax.block_until_ready(_reference(x, w_conv, w_dense))

    assert out.shape == (B, T, attention_dim), out.shape
    assert jnp.allclose(out, ref, atol=1e-4, rtol=1e-4), "mismatch vs reference"
    print("KERNEL_OK")
</pallas_src>

<mosaic_0001>
module attributes {stable_mosaic.version = 11 : i64} {
  func.func @_location_kernel(%arg0: i32, %arg1: memref<1x18x2xf32, #tpu.memory_space<vmem>>, %arg2: memref<6x128xf32, #tpu.memory_space<vmem>>, %arg3: memref<1x16x128xf32, #tpu.memory_space<vmem>>) attributes {dimension_semantics = [#tpu.dimension_semantics<parallel>], iteration_bounds = array<i64: 2>, scalar_prefetch = 0 : i64, scratch_operands = 0 : i64, tpu.core_type = #tpu.core_type<tc>, window_params = [{transform_indices = @transform_0, window_bounds = array<i64: 1, 18, 2>}, {pipeline_mode = #tpu.pipeline_mode<synchronous>, transform_indices = @transform_1, window_bounds = array<i64: 6, 128>}, {transform_indices = @transform_2, window_bounds = array<i64: 1, 16, 128>}]} {
    %c0 = arith.constant 0 : index
    %c0_0 = arith.constant 0 : index
    %c0_1 = arith.constant 0 : index
    %0 = vector.load %arg1[%c0, %c0_0, %c0_1] : memref<1x18x2xf32, #tpu.memory_space<vmem>>, vector<1x18x2xf32>
    %cst = arith.constant 0.000000e+00 : f32
    %1 = vector.broadcast %cst : f32 to vector<1x16x128xf32>
    %2 = vector.extract_strided_slice %0 {offsets = [0, 0, 0], sizes = [1, 16, 2], strides = [1, 1, 1]} : vector<1x18x2xf32> to vector<1x16x2xf32>
    %c0_2 = arith.constant 0 : index
    %c0_3 = arith.constant 0 : index
    %3 = vector.load %arg2[%c0_2, %c0_3] : memref<6x128xf32, #tpu.memory_space<vmem>>, vector<1x128xf32>
    %4 = vector.shape_cast %3 : vector<1x128xf32> to vector<1x1x128xf32>
    %5 = vector.extract_strided_slice %2 {offsets = [0, 0, 0], sizes = [1, 16, 1], strides = [1, 1, 1]} : vector<1x16x2xf32> to vector<1x16x1xf32>
    %6 = vector.broadcast %5 : vector<1x16x1xf32> to vector<1x16x128xf32>
    %7 = vector.broadcast %4 : vector<1x1x128xf32> to vector<1x16x128xf32>
    %8 = arith.mulf %6, %7 : vector<1x16x128xf32>
    %9 = arith.addf %1, %8 : vector<1x16x128xf32>
    %c1 = arith.constant 1 : index
    %c0_4 = arith.constant 0 : index
    %10 = vector.load %arg2[%c1, %c0_4] : memref<6x128xf32, #tpu.memory_space<vmem>>, vector<1x128xf32>
    %11 = vector.shape_cast %10 : vector<1x128xf32> to vector<1x1x128xf32>
    %12 = vector.extract_strided_slice %2 {offsets = [0, 0, 1], sizes = [1, 16, 1], strides = [1, 1, 1]} : vector<1x16x2xf32> to vector<1x16x1xf32>
    %13 = vector.broadcast %12 : vector<1x16x1xf32> to vector<1x16x128xf32>
    %14 = vector.broadcast %11 : vector<1x1x128xf32> to vector<1x16x128xf32>
    %15 = arith.mulf %13, %14 : vector<1x16x128xf32>
    %16 = arith.addf %9, %15 : vector<1x16x128xf32>
    %17 = vector.extract_strided_slice %0 {offsets = [0, 1, 0], sizes = [1, 16, 2], strides = [1, 1, 1]} : vector<1x18x2xf32> to vector<1x16x2xf32>
    %c2 = arith.constant 2 : index
    %c0_5 = arith.constant 0 : index
    %18 = vector.load %arg2[%c2, %c0_5] : memref<6x128xf32, #tpu.memory_space<vmem>>, vector<1x128xf32>
    %19 = vector.shape_cast %18 : vector<1x128xf32> to vector<1x1x128xf32>
    %20 = vector.extract_strided_slice %17 {offsets = [0, 0, 0], sizes = [1, 16, 1], strides = [1, 1, 1]} : vector<1x16x2xf32> to vector<1x16x1xf32>
    %21 = vector.broadcast %20 : vector<1x16x1xf32> to vector<1x16x128xf32>
    %22 = vector.broadcast %19 : vector<1x1x128xf32> to vector<1x16x128xf32>
    %23 = arith.mulf %21, %22 : vector<1x16x128xf32>
    %24 = arith.addf %16, %23 : vector<1x16x128xf32>
    %c3 = arith.constant 3 : index
    %c0_6 = arith.constant 0 : index
    %25 = vector.load %arg2[%c3, %c0_6] : memref<6x128xf32, #tpu.memory_space<vmem>>, vector<1x128xf32>
    %26 = vector.shape_cast %25 : vector<1x128xf32> to vector<1x1x128xf32>
    %27 = vector.extract_strided_slice %17 {offsets = [0, 0, 1], sizes = [1, 16, 1], strides = [1, 1, 1]} : vector<1x16x2xf32> to vector<1x16x1xf32>
    %28 = vector.broadcast %27 : vector<1x16x1xf32> to vector<1x16x128xf32>
    %29 = vector.broadcast %26 : vector<1x1x128xf32> to vector<1x16x128xf32>
    %30 = arith.mulf %28, %29 : vector<1x16x128xf32>
    %31 = arith.addf %24, %30 : vector<1x16x128xf32>
    %32 = vector.extract_strided_slice %0 {offsets = [0, 2, 0], sizes = [1, 16, 2], strides = [1, 1, 1]} : vector<1x18x2xf32> to vector<1x16x2xf32>
    %c4 = arith.constant 4 : index
    %c0_7 = arith.constant 0 : index
    %33 = vector.load %arg2[%c4, %c0_7] : memref<6x128xf32, #tpu.memory_space<vmem>>, vector<1x128xf32>
    %34 = vector.shape_cast %33 : vector<1x128xf32> to vector<1x1x128xf32>
    %35 = vector.extract_strided_slice %32 {offsets = [0, 0, 0], sizes = [1, 16, 1], strides = [1, 1, 1]} : vector<1x16x2xf32> to vector<1x16x1xf32>
    %36 = vector.broadcast %35 : vector<1x16x1xf32> to vector<1x16x128xf32>
    %37 = vector.broadcast %34 : vector<1x1x128xf32> to vector<1x16x128xf32>
    %38 = arith.mulf %36, %37 : vector<1x16x128xf32>
    %39 = arith.addf %31, %38 : vector<1x16x128xf32>
    %c5 = arith.constant 5 : index
    %c0_8 = arith.constant 0 : index
    %40 = vector.load %arg2[%c5, %c0_8] : memref<6x128xf32, #tpu.memory_space<vmem>>, vector<1x128xf32>
    %41 = vector.shape_cast %40 : vector<1x128xf32> to vector<1x1x128xf32>
    %42 = vector.extract_strided_slice %32 {offsets = [0, 0, 1], sizes = [1, 16, 1], strides = [1, 1, 1]} : vector<1x16x2xf32> to vector<1x16x1xf32>
    %43 = vector.broadcast %42 : vector<1x16x1xf32> to vector<1x16x128xf32>
    %44 = vector.broadcast %41 : vector<1x1x128xf32> to vector<1x16x128xf32>
    %45 = arith.mulf %43, %44 : vector<1x16x128xf32>
    %46 = arith.addf %39, %45 : vector<1x16x128xf32>
    %c0_9 = arith.constant 0 : index
    %c0_10 = arith.constant 0 : index
    %c0_11 = arith.constant 0 : index
    %47 = vector.load %arg3[%c0_9, %c0_10, %c0_11] : memref<1x16x128xf32, #tpu.memory_space<vmem>>, vector<1x16x128xf32>
    tpu.vector_store %arg3[%c0_9, %c0_10, %c0_11], %46 {strides = array<i32>} : memref<1x16x128xf32, #tpu.memory_space<vmem>>, vector<1x16x128xf32>,
    return
  }
  func.func @transform_0(%arg0: i32) -> (i32, i32, i32) {
    %c0_i32 = arith.constant 0 : i32
    %c0_i32_0 = arith.constant 0 : i32
    %c0_i32_1 = arith.constant 0 : i32
    return %arg0, %c0_i32, %c0_i32_0 : i32, i32, i32
  }
  func.func @transform_1(%arg0: i32) -> (i32, i32) {
    %c0_i32 = arith.constant 0 : i32
    %c0_i32_0 = arith.constant 0 : i32
    %c0_i32_1 = arith.constant 0 : i32
    return %c0_i32, %c0_i32_0 : i32, i32
  }
  func.func @transform_2(%arg0: i32) -> (i32, i32, i32) {
    %c0_i32 = arith.constant 0 : i32
    %c0_i32_0 = arith.constant 0 : i32
    %c0_i32_1 = arith.constant 0 : i32
    return %arg0, %c0_i32, %c0_i32_0 : i32, i32, i32
  }
}

</mosaic_0001>

<bundles_post_ra>
// kernel: location_layer_forward.1
= control target key start
LH: loop header
LB: loop body
LE: loop exit
PB: predicated region body
PF: predicated region fallthrough
CT: control target
= control target key end

     0   :  { %7 = vsyncpa [#allocation3], 0  ;;  %s633_s0 = inlined_call_operand.vmem [shape: f32[2,18,2], index: 0, kind: input, shape index: {}]   ;;  %s634_s1 = inlined_call_operand.vmem [shape: f32[6,128], index: 1, kind: input, shape index: {}]   ;;  %s635_s2 = inlined_call_operand.hbm [shape: f32[2,16,128], index: 2, kind: output, shape index: {}]  }
   0x1   :  { %9 = vsyncpa [#allocation3 + $0x1], 0  ;;  %s500_s9 = smov 0   ;;  %s502_s10 = smov 0  }
   0x2   :  { %s504_s11 = smov 0   ;;  %s506_s12 = smov 0  }
   0x3 LB: > { %s521_s13 = sadd.s32 4294967295, %s478_s12   ;;  %s350_s14 = sadd.s32 4294967294, %s478_s12   ;;  %s478_s12 = sphi %s506_s12, %s641_s12   ;;  %s474_s11 = sphi %s504_s11, %s640_s11   ;;  %s470_s10 = sphi %s502_s10, %s639_s10   ;;  %s466_s9 = sphi %s500_s9, %s638_s9  }
   0x4   : > { %s525_s15 = sadd.s32 1, %s478_s12   ;;  %s69_s16 = sadd.s32 1, %s474_s11 }
   0x5   : > { %s66_s17 = ssub.s32 %s478_s12, %s525_s15  ;;  %p79_p0 = scmp.ne.s32.totalorder %s474_s11, %s470_s10 }
   0x6   : > { %p67_p1 = scmp.eq.s32.totalorder %s66_s17, 0  ;;  %p80_p2 = scmp.eq.s32.totalorder %s521_s13, 1 }
   0x7   : > { %p85_p3 = scmp.ne.s32.totalorder %s470_s10, %s466_s9  ;;  %p86_p4 = scmp.eq.s32.totalorder %s350_s14, 1 }
   0x8   : > { %s536_s18 = scalar_select %p67_p1, %s474_s11, %s69_s16  }
   0x9   : > { %p538_p5 = por %p80_p2, %p79_p0  ;;  %p542_p6 = por %p86_p4, %p85_p3 }
   0xa   : > { %p353_p7 = scmp.ge.s32.totalorder %s478_s12, 1  ;;  %p115_p8 = scmp.lt.s32.totalorder %s478_s12, 3 }
   0xc   : > { %p116_p9 = pnand %p353_p7, %p115_p8 }
   0xd   : > { %p137_p10 = scmp.lt.s32.totalorder (!%p116_p9), %s521_s13, 1  ;;  %v480_v0 = vmov (!%p116_p9), 0   ;;  %v481_v4 = vmov (!%p116_p9), 1   ;;  %v358_v7 = vld [vmem:[%s634_s1 + $0x2] ss:$0 sm:$0xff] (!%p116_p9)  ;;  %s134_s8 = sand.u32 (!%p116_p9), 1, %s470_s10  }
   0xe   : > { %119 = sbr.rel (%p116_p9) target bundleno = 191 (0xbf), region = 28  ;;  %413 = vset.pattern.permute.xlu1 (!%p116_p9), %v480_v0  ;;  %412 = vset.pattern.permute.xlu0 (!%p116_p9), %v480_v0  ;;  %v357_v8 = vld [vmem:[%s634_s1 + $0x1] ss:$0 sm:$0xff] (!%p116_p9)  ;;  %v356_v10 = vld [vmem:[%s634_s1] ss:$0 sm:$0xff] (!%p116_p9)  ;;  %vm197_vm0 = vcmask (!%p116_p9), 1046528  }
   0xf   : > { %v360_v11 = vld [vmem:[%s634_s1 + $0x4] ss:$0 sm:$0xff] (!%p116_p9)  ;;  %v359_v16 = vld [vmem:[%s634_s1 + $0x3] ss:$0 sm:$0xff] (!%p116_p9)  ;;  %v361_v26 = vld [vmem:[%s634_s1 + $0x5] ss:$0 sm:$0xff] (!%p116_p9) }
  0x10   : > { %s354_s17 = sshll.u32 (!%p116_p9), %s134_s8, 4  ;;  %vm242_vm1 = vcmask (!%p116_p9), 1045504   ;;  %s482_s28 = smov (!%p116_p9), [#allocation2]  }
  0x11   : > { %s420_s29 = sshll.u32 (!%p116_p9), %s482_s28, 4  ;;  %s421_s29 = int_to_ptr.vmem [resolvable:$false] %s420_s29 }
  0x12   : > { %s422_s30 = scalar_lea.vmem (!%p116_p9), %s421_s29, 512 }
  0x15   : > { %s138_s21 = scalar_select %p137_p10, %s521_s13, 1 }
  0x17   : > { %s368_s22 = smul.u32 24, %s138_s21  ;;  %s367_s21 = sshll.u32 %s521_s13, 8 }
  0x18   : > { %s586_s26 = scalar_lea.hbm %s635_s2, %s367_s21  ;;  %s592_s13 = scalar_lea.sflag [#allocation3], %s134_s8 }
  0x19   : > { %s141_s25 = scalar_lea.vmem %s633_s0, %s368_s22  ;;  %s136_s22 = scalar_lea.vmem [#allocation2], %s354_s17 }
  0x1a   : > { %v144_v1 = vld [vmem:[%s141_s25 + $0x10] sm:$0x3]  ;;  %v142_v2 = vld [vmem:[%s141_s25] sm:$0xff]  ;;  %v143_v3 = vld [vmem:[%s141_s25 + $0x8] sm:$0xff]  ;;  %s288_s23 = sshll.u32 %s136_s22, 4  ;;  %s588_s23 = int_to_ptr.vmem [resolvable:$true] %s288_s23 }
  0x1b   : > { %184 = vperm.xlu1 %413, %v144_v1   ;;  %148 = vperm.xlu0 %412, %v142_v2   ;;  %s416_s27 = scalar_lea.vmem %s588_s23, 256  ;;  %p423_p0 = scmp.lt.s32.totalorder %s588_s23, %s421_s29 }
  0x1c   : > { %p417_p11 = scmp.ne.s32.totalorder %s588_s23, %s416_s27  ;;  %p424_p1 = scmp.lt.s32.totalorder %s422_s30, %s416_s27 }
  0x1e   : > { %p418_p12 = pnand %p417_p11, %p538_p5  ;;  %p425_p2 = por %p424_p1, %p423_p0 }
  0x1f   : > { %414 = vset.pattern.permute.xlu1 %v481_v4  ;;  %153 = vperm.xlu0 %412, %v143_v3  }
  0x20   : > { %166 = vperm.xlu1 %414, %v142_v2   ;;  %p419_p13 = pneg %p418_p12 }
  0x22   : > { %p426_p3 = pnand %p425_p2, %p419_p13 }
  0x23   : > { %415 = vset.pattern.permute.xlu0 %v481_v4 }
  0x24   : > { %209 = vperm.xlu1 %414, %v144_v1   ;;  %170 = vperm.xlu0 %415, %v143_v3  }
  0x9a   : > { %v149_v5 = vpop.permute.xlu0 %148  ;;  %v185_v6 = vpop.permute.xlu1 %184 }
  0x9b   : > { %v191_v12 = vmul.f32 %v358_v7, %v149_v5  ;;  %v193_v13 = vmul.f32 %v358_v7, %v185_v6  ;;  %v160_v19 = vmul.f32 %v356_v10, %v149_v5  ;;  %v236_v20 = vmul.f32 %v360_v11, %v149_v5 }
  0x9c   : > { %v238_v21 = vmul.f32 %v360_v11, %v185_v6 }
  0x9d   : > { %v198_v22 = vrot.slane %v191_v12, 1  ;;  %v201_v23 = vrot.slane %v193_v13, 1  ;;  %v243_v44 = vrot.slane %v236_v20, 2 }
  0x9e   : > { %v154_v9 = vpop.permute.xlu0 %153  ;;  %v246_v45 = vrot.slane %v238_v21, 2 }
  0x9f   : > { %v192_v14 = vmul.f32 %v358_v7, %v154_v9  ;;  %v167_v15 = vpop.permute.xlu1 %166  ;;  %v237_v24 = vmul.f32 %v360_v11, %v154_v9  ;;  %v161_v29 = vmul.f32 %v356_v10, %v154_v9 }
  0xa0   : > { %v177_v17 = vmul.f32 %v357_v8, %v167_v15  ;;  %v216_v25 = vmul.f32 %v359_v16, %v167_v15  ;;  %v257_v37 = vmul.f32 %v361_v26, %v167_v15 }
  0xa1   : > { %v199_v18 = vrot.slane %v192_v14, 1  ;;  %v244_v40 = vrot.slane %v237_v24, 2 }
  0xa2   : > { %v179_v31 = vadd.f32 %v177_v17, %v160_v19  ;;  %v222_v41 = vrot.slane %v216_v25, 1  ;;  %v263_v56 = vrot.slane %v257_v37, 2 }
  0xa3   : > { %v210_v27 = vpop.permute.xlu1 %209  ;;  %v171_v28 = vpop.permute.xlu0 %170  ;;  %v200_v33 = vsel %vm197_vm0, %v198_v22, %v199_v18  ;;  %v202_v42 = vsel %vm197_vm0, %v199_v18, %v201_v23  ;;  %v245_v54 = vsel %vm242_vm1, %v243_v44, %v244_v40  ;;  %v247_v55 = vsel %vm242_vm1, %v244_v40, %v246_v45 }
  0xa4   : > { %v218_v30 = vmul.f32 %v359_v16, %v210_v27  ;;  %v178_v32 = vmul.f32 %v357_v8, %v171_v28  ;;  %v259_v34 = vmul.f32 %v361_v26, %v210_v27  ;;  %v217_v35 = vmul.f32 %v359_v16, %v171_v28 }
  0xa5   : > { %v258_v36 = vmul.f32 %v361_v26, %v171_v28  ;;  %v205_v46 = vadd.f32 %v200_v33, %v179_v31 }
  0xa6   : > { %v225_v38 = vrot.slane %v218_v30, 1  ;;  %v180_v39 = vadd.f32 %v178_v32, %v161_v29  ;;  %v223_v43 = vrot.slane %v217_v35, 1  ;;  %v266_v48 = vrot.slane %v259_v34, 2 }
  0xa7   : > { %v264_v51 = vrot.slane %v258_v36, 2 }
  0xa8   : > { %v206_v47 = vadd.f32 %v202_v42, %v180_v39  ;;  %v224_v49 = vsel %vm197_vm0, %v222_v41, %v223_v43  ;;  %v226_v50 = vsel %vm197_vm0, %v223_v43, %v225_v38 }
  0xa9   : > { %v229_v52 = vadd.f32 %v224_v49, %v205_v46  ;;  %v265_v59 = vsel %vm242_vm1, %v263_v56, %v264_v51  ;;  %v267_v60 = vsel %vm242_vm1, %v264_v51, %v266_v48 }
  0xaa   : > { %v230_v53 = vadd.f32 %v226_v50, %v206_v47 }
  0xab   : > { %v250_v57 = vadd.f32 %v245_v54, %v229_v52 }
  0xac   : > { %v251_v58 = vadd.f32 %v247_v55, %v230_v53 }
  0xad   : > { %v270_v61 = vadd.f32 %v265_v59, %v250_v57 }
  0xae   : > { %v271_v62 = vadd.f32 %v267_v60, %v251_v58 }
  0xaf   : > { %272 = vst [vmem:[%s136_s22] sm:$0xff] %v270_v61 }
  0xb0   : > { %273 = vst [vmem:[%s136_s22 + $0x8] sm:$0xff] %v271_v62 }
  0xb1   : > { %429 = shalt.err (!%p426_p3)
}
  0xb2   : > { %s430_s3 = scalar_lea.hbm %s586_s26, 256  ;;  %s434_s6 = scalar_lea.hbm %s635_s2, 512 }
  0xb3   : > { %p431_p4 = scmp.ne.s32.totalorder %s586_s26, %s430_s3  ;;  %p435_p9 = scmp.lt.u32.totalorder %s586_s26, %s635_s2 }
  0xb4   : > { %p436_p10 = scmp.lt.u32.totalorder %s434_s6, %s430_s3  ;;  %p438_p12 = scmp.lt.u32.totalorder %s430_s3, %s586_s26 }
  0xb5   : > { %p432_p7 = pnand %p431_p4, %p538_p5 }
  0xb6   : > { %p437_p11 = por %p436_p10, %p435_p9 }
  0xb7   : > { %p433_p8 = pneg %p432_p7 }
  0xb8   : > { %p439_p13 = por %p438_p12, %p437_p11 }
  0xba   : > { %p440_p0 = pnand %p439_p13, %p433_p8 }
  0xbc   : > { %443 = shalt.err (!%p440_p0)
}
  0xbd   : > { %s483_s14 = smov 128   ;;  %s484_s16 = smov 8  }
  0xbe   : > { %369 = dma.vmem_to_hbm [thread:$0]  (%p538_p5), %s588_s23, 256, %s586_s26, %s592_s13, %s483_s14, %s483_s14, %s484_s16  }
  0xbf PF: > { %p375_p1 = scmp.ge.s32.totalorder %s478_s12, 2  ;;  %s303_s17 = sand.u32 1, %s466_s9  }
  0xc0   : > { %s304_s21 = scalar_lea.sflag [#allocation3], %s303_s17 }
  0xc1   : > { %p372_p2 = pnand %p375_p1, %p542_p6 }
  0xc3   : > { %461 = dma.done.wait (!%p372_p2), %s304_s21, 256  }
  0xc4   : > { %463 = vsyncadd (!%p372_p2), %s304_s21, 4294967040  ;;  %p12_p3 = scmp.ge.s32.totalorder %s525_s15, 4   ;;  %s638_s9 = smov %s470_s10 }
  0xc5   : > { %s639_s10 = smov %s474_s11  ;;  %s640_s11 = smov %s536_s18 }
  0xc6   : > { %s641_s12 = smov %s525_s15  ;;  %14 = sbr.rel (!%p12_p3) target bundleno = 3 (0x3), region = 63 }
  0xcd   :  { %309 = vsyncpa [#allocation3], 1 }
  0xce   :  { %311 = vsyncpa [#allocation3 + $0x1], 1 }

</bundles_post_ra>
